<compile_context>
chip_gen: v6e
topology: v6e:2x2x1
jax: 0.10.0
libtpu: 0.0.40
codegen_flags: <defaults>
</compile_context>

<pallas_src>
import functools

import jax
import jax.numpy as jnp
from jax.experimental import pallas as pl
from jax.experimental.pallas import tpu as pltpu

_HIDDEN = 128
_LANE = 128
_VMEM_LIMIT = 32 * 1024 * 1024  # safe on v5e/v6e (128 MiB phys) and v7x (64 MiB)


def _round_up(x, m):
    return (x + m - 1) // m * m


def _mlp_logits(x, w1, b1, w2, b2, w3, b3):
    """3-layer MLP body: bf16 MXU operands, f32 accumulation & elementwise.

    Returns (TB, act_pad) f32 logits.  Dropout is identity (eval mode).
    """
    h = jnp.dot(x.astype(jnp.bfloat16), w1, preferred_element_type=jnp.float32)
    h = jnp.maximum(h + b1, 0.0).astype(jnp.bfloat16)   # fused bias+ReLU+cast
    h = jnp.dot(h, w2, preferred_element_type=jnp.float32)
    h = jnp.maximum(h + b2, 0.0).astype(jnp.bfloat16)
    logits = jnp.dot(h, w3, preferred_element_type=jnp.float32)
    return logits + b3


def _tanh_kernel(obs_ref, w1_ref, b1_ref, w2_ref, b2_ref, w3_ref, b3_ref,
                 out_ref, *, act_dim):
    """Continuous-action head: tanh(logits), compact (tile, act_dim) store."""
    logits = _mlp_logits(obs_ref[...], w1_ref[...], b1_ref[...],
                         w2_ref[...], b2_ref[...], w3_ref[...], b3_ref[...])
    out_ref[...] = jnp.tanh(logits[:, :act_dim]).astype(out_ref.dtype)


def _softmax_stats_kernel(obs_ref, w1_ref, b1_ref, w2_ref, b2_ref, w3_ref,
                          b3_ref, m_ref, s_ref, *, valid_rows, tile):
    """Pass 1 of softmax(dim=0): per-column running max + sum-of-exp."""
    i = pl.program_id(0)

    @pl.when(i == 0)
    def _():
        m_ref[...] = jnp.full_like(m_ref, -jnp.inf)
        s_ref[...] = jnp.zeros_like(s_ref)

    logits = _mlp_logits(obs_ref[...], w1_ref[...], b1_ref[...],
                         w2_ref[...], b2_ref[...], w3_ref[...], b3_ref[...])
    rows = jax.lax.broadcasted_iota(jnp.int32, logits.shape, 0) + i * tile
    # Mask rows past the true batch (ragged last block may contain garbage,
    # possibly NaN; jnp.where replaces them before max/exp).
    logits = jnp.where(rows < valid_rows, logits, -1e30)

    m_old = m_ref[...]
    m_new = jnp.maximum(m_old, jnp.max(logits, axis=0, keepdims=True))
    s_ref[...] = (s_ref[...] * jnp.exp(m_old - m_new)
                  + jnp.sum(jnp.exp(logits - m_new), axis=0, keepdims=True))
    m_ref[...] = m_new


def _softmax_norm_kernel(m_ref, s_ref, obs_ref, w1_ref, b1_ref, w2_ref, b2_ref,
                         w3_ref, b3_ref, out_ref, *, act_dim):
    """Pass 2 of softmax(dim=0): recompute logits and normalize (exact)."""
    logits = _mlp_logits(obs_ref[...], w1_ref[...], b1_ref[...],
                         w2_ref[...], b2_ref[...], w3_ref[...], b3_ref[...])
    probs = jnp.exp(logits - m_ref[...]) / s_ref[...]
    out_ref[...] = probs[:, :act_dim].astype(out_ref.dtype)


def actor_forward(obs, params, categorical: bool = False, tile_b: int = 1024):
    """Actor MLP forward pass via batch-tiled Pallas kernels.

    obs: (B, obs_dim) float array.
    params: w1 (obs_dim,128), b1 (1,128), w2 (128,128), b2 (1,128),
            w3 (128,act_dim), b3 (1,act_dim) — stored (in, out), i.e.
            transposed vs. PyTorch, so kernels compute y = x @ W + b.
    """
    obs = jnp.asarray(obs, jnp.float32)
    B, obs_dim = obs.shape
    hidden = params["w1"].shape[1]
    act_dim = params["w3"].shape[1]
    act_pad = _round_up(max(act_dim, 1), _LANE)

    # bf16 matmul operands, f32 biases; head padded to 128 lanes for the MXU.
    w1 = params["w1"].astype(jnp.bfloat16)
    w2 = params["w2"].astype(jnp.bfloat16)
    b1 = params["b1"].reshape(1, hidden).astype(jnp.float32)
    b2 = params["b2"].reshape(1, hidden).astype(jnp.float32)
    w3 = jnp.zeros((hidden, act_pad), jnp.bfloat16).at[:, :act_dim].set(
        params["w3"].astype(jnp.bfloat16))
    b3 = jnp.zeros((1, act_pad), jnp.float32).at[:, :act_dim].set(
        params["b3"].reshape(1, act_dim).astype(jnp.float32))
    weights = (w1, b1, w2, b2, w3, b3)

    # Batch tiling: big tiles amortize the ~0.35 us/step pipeline overhead.
    tile = min(_round_up(tile_b, 8), _round_up(B, 8))
    grid = (pl.cdiv(B, tile),)

    def resident(arr):
        # Constant block index -> parameter stays in VMEM, DMA'd only once.
        shp = arr.shape
        return pl.BlockSpec(shp, lambda i: (0,) * len(shp))

    weight_specs = [resident(w) for w in weights]
    obs_spec = pl.BlockSpec((tile, obs_dim), lambda i: (i, 0))
    out_spec = pl.BlockSpec((tile, act_dim), lambda i: (i, 0))

    flops = 2 * B * (obs_dim * hidden + hidden * hidden + hidden * act_pad)
    weight_bytes = sum(int(w.size) * w.dtype.itemsize for w in weights)
    cost = pl.CostEstimate(
        flops=flops,
        transcendentals=B * act_pad,
        bytes_accessed=B * obs_dim * 4 + B * act_dim * 4 + weight_bytes)

    par_params = pltpu.CompilerParams(dimension_semantics=("parallel",),
                                      vmem_limit_bytes=_VMEM_LIMIT)
    arb_params = pltpu.CompilerParams(dimension_semantics=("arbitrary",),
                                      vmem_limit_bytes=_VMEM_LIMIT)

    if not categorical:
        out = pl.pallas_call(
            functools.partial(_tanh_kernel, act_dim=act_dim),
            out_shape=jax.ShapeDtypeStruct((B, act_dim), jnp.float32),
            grid_spec=pltpu.PrefetchScalarGridSpec(
                num_scalar_prefetch=0,
                grid=grid,
                in_specs=[obs_spec] + weight_specs,
                out_specs=out_spec),
            compiler_params=par_params,
            cost_estimate=cost,
        )(obs, *weights)
        return out

    # Categorical head: softmax over dim=0 (batch axis) — two-pass, tiled.
    # Pass 1: running column-wise max & sum-of-exp (reduction axis, resident).
    m, s = pl.pallas_call(
        functools.partial(_softmax_stats_kernel, valid_rows=B, tile=tile),
        out_shape=(jax.ShapeDtypeStruct((1, act_pad), jnp.float32),
                   jax.ShapeDtypeStruct((1, act_pad), jnp.float32)),
        grid_spec=pltpu.PrefetchScalarGridSpec(
            num_scalar_prefetch=0,
            grid=grid,
            in_specs=[obs_spec] + weight_specs,
            out_specs=(pl.BlockSpec((1, act_pad), lambda i: (0, 0)),
                       pl.BlockSpec((1, act_pad), lambda i: (0, 0)))),
        compiler_params=arb_params,
        cost_estimate=cost,
    )(obs, *weights)

    # Pass 2: recompute logits per tile and normalize (parallel over batch).
    out = pl.pallas_call(
        functools.partial(_softmax_norm_kernel, act_dim=act_dim),
        out_shape=jax.ShapeDtypeStruct((B, act_dim), jnp.float32),
        grid_spec=pltpu.PrefetchScalarGridSpec(
            num_scalar_prefetch=0,
            grid=grid,
            in_specs=[resident(m), resident(s), obs_spec] + weight_specs,
            out_specs=out_spec),
        compiler_params=par_params,
        cost_estimate=cost,
    )(m, s, obs, *weights)
    return out


def init_params(key, obs_dim, act_dim, hidden=_HIDDEN):
    """Deterministic init mirroring nn.Linear's U(-1/sqrt(fan_in), +1/sqrt(fan_in)).

    Weights stored as (in_features, out_features) — transposed vs. PyTorch.
    """
    def linear(k, fan_in, fan_out):
        kw, kb = jax.random.split(k)
        bound = 1.0 / jnp.sqrt(fan_in)
        w = jax.random.uniform(kw, (fan_in, fan_out), jnp.float32, -bound, bound)
        b = jax.random.uniform(kb, (1, fan_out), jnp.float32, -bound, bound)
        return w, b

    k1, k2, k3 = jax.random.split(key, 3)
    w1, b1 = linear(k1, obs_dim, hidden)
    w2, b2 = linear(k2, hidden, hidden)
    w3, b3 = linear(k3, hidden, act_dim)
    return {"w1": w1, "b1": b1, "w2": w2, "b2": b2, "w3": w3, "b3": b3}


def _reference_forward(obs, params, categorical=False):
    h1 = jnp.maximum(obs @ params["w1"] + params["b1"], 0.0)
    h2 = jnp.maximum(h1 @ params["w2"] + params["b2"], 0.0)
    logits = h2 @ params["w3"] + params["b3"]
    if categorical:
        return jax.nn.softmax(logits, axis=0)
    return jnp.tanh(logits)


if __name__ == "__main__":
    key = jax.random.PRNGKey(0)
    k_obs, k_params, k_big = jax.random.split(key, 3)

    batch, obs_dim, act_dim = 8, 32, 8
    obs = jax.random.normal(k_obs, (batch, obs_dim), dtype=jnp.float32)
    params = init_params(k_params, obs_dim, act_dim)

    # Continuous-action head (tanh) and categorical head (softmax over dim=0).
    out = jax.block_until_ready(actor_forward(obs, params, categorical=False))
    out_cat = jax.block_until_ready(actor_forward(obs, params, categorical=True))

    ref = _reference_forward(obs, params, categorical=False)
    ref_cat = _reference_forward(obs, params, categorical=True)
    assert out.shape == (batch, act_dim)
    assert out_cat.shape == (batch, act_dim)
    # bf16 matmul operands vs. f32 reference -> modest tolerance.
    assert jnp.allclose(out, ref, atol=2e-2, rtol=2e-2)
    assert jnp.allclose(out_cat, ref_cat, atol=2e-2, rtol=2e-2)
    # softmax over dim=0: every column sums to 1 (exact normalization).
    assert jnp.allclose(out_cat.sum(axis=0), jnp.ones((act_dim,)), atol=5e-3)

    # Larger batch with a small tile to exercise multi-step grids, the ragged
    # last block, and the two-pass (online max/sum) categorical reduction.
    big_b = 300
    obs_big = jax.random.normal(k_big, (big_b, obs_dim), dtype=jnp.float32)

    out_big = jax.block_until_ready(
        actor_forward(obs_big, params, categorical=False, tile_b=128))
    ref_big = _reference_forward(obs_big, params, categorical=False)
    assert out_big.shape == (big_b, act_dim)
    assert jnp.allclose(out_big, ref_big, atol=2e-2, rtol=2e-2)

    out_big_cat = jax.block_until_ready(
        actor_forward(obs_big, params, categorical=True, tile_b=128))
    ref_big_cat = _reference_forward(obs_big, params, categorical=True)
    assert out_big_cat.shape == (big_b, act_dim)
    assert jnp.allclose(out_big_cat, ref_big_cat, atol=2e-2, rtol=2e-2)
    assert jnp.allclose(out_big_cat.sum(axis=0), jnp.ones((act_dim,)), atol=5e-3)

    print("KERNEL_OK")
</pallas_src>

<mosaic_0001>
module attributes {stable_mosaic.version = 11 : i64} {
  func.func @_tanh_kernel(%arg0: i32, %arg1: memref<8x32xf32, #tpu.memory_space<vmem>>, %arg2: memref<32x128xbf16, #tpu.memory_space<vmem>>, %arg3: memref<1x128xf32, #tpu.memory_space<vmem>>, %arg4: memref<128x128xbf16, #tpu.memory_space<vmem>>, %arg5: memref<1x128xf32, #tpu.memory_space<vmem>>, %arg6: memref<128x128xbf16, #tpu.memory_space<vmem>>, %arg7: memref<1x128xf32, #tpu.memory_space<vmem>>, %arg8: memref<8x8xf32, #tpu.memory_space<vmem>>) attributes {dimension_semantics = [#tpu.dimension_semantics<parallel>], iteration_bounds = array<i64: 1>, scalar_prefetch = 0 : i64, scratch_operands = 0 : i64, tpu.core_type = #tpu.core_type<tc>, window_params = [{transform_indices = @transform_0, window_bounds = array<i64: 8, 32>}, {pipeline_mode = #tpu.pipeline_mode<synchronous>, transform_indices = @transform_1, window_bounds = array<i64: 32, 128>}, {pipeline_mode = #tpu.pipeline_mode<synchronous>, transform_indices = @transform_2, window_bounds = array<i64: 1, 128>}, {pipeline_mode = #tpu.pipeline_mode<synchronous>, transform_indices = @transform_3, window_bounds = array<i64: 128, 128>}, {pipeline_mode = #tpu.pipeline_mode<synchronous>, transform_indices = @transform_4, window_bounds = array<i64: 1, 128>}, {pipeline_mode = #tpu.pipeline_mode<synchronous>, transform_indices = @transform_5, window_bounds = array<i64: 128, 128>}, {pipeline_mode = #tpu.pipeline_mode<synchronous>, transform_indices = @transform_6, window_bounds = array<i64: 1, 128>}, {transform_indices = @transform_7, window_bounds = array<i64: 8, 8>}]} {
    %c0 = arith.constant 0 : index
    %c0_0 = arith.constant 0 : index
    %0 = vector.load %arg1[%c0, %c0_0] : memref<8x32xf32, #tpu.memory_space<vmem>>, vector<8x32xf32>
    %c0_1 = arith.constant 0 : index
    %c0_2 = arith.constant 0 : index
    %1 = vector.load %arg2[%c0_1, %c0_2] : memref<32x128xbf16, #tpu.memory_space<vmem>>, vector<32x128xbf16>
    %c0_3 = arith.constant 0 : index
    %c0_4 = arith.constant 0 : index
    %2 = vector.load %arg3[%c0_3, %c0_4] : memref<1x128xf32, #tpu.memory_space<vmem>>, vector<1x128xf32>
    %c0_5 = arith.constant 0 : index
    %c0_6 = arith.constant 0 : index
    %3 = vector.load %arg4[%c0_5, %c0_6] : memref<128x128xbf16, #tpu.memory_space<vmem>>, vector<128x128xbf16>
    %c0_7 = arith.constant 0 : index
    %c0_8 = arith.constant 0 : index
    %4 = vector.load %arg5[%c0_7, %c0_8] : memref<1x128xf32, #tpu.memory_space<vmem>>, vector<1x128xf32>
    %c0_9 = arith.constant 0 : index
    %c0_10 = arith.constant 0 : index
    %5 = vector.load %arg6[%c0_9, %c0_10] : memref<128x128xbf16, #tpu.memory_space<vmem>>, vector<128x128xbf16>
    %c0_11 = arith.constant 0 : index
    %c0_12 = arith.constant 0 : index
    %6 = vector.load %arg7[%c0_11, %c0_12] : memref<1x128xf32, #tpu.memory_space<vmem>>, vector<1x128xf32>
    %7 = arith.truncf %0 : vector<8x32xf32> to vector<8x32xbf16>
    %cst = arith.constant dense<0.000000e+00> : vector<8x128xf32>
    %8 = tpu.matmul %7, %1, %cst {dimension_numbers = #tpu.dot_dimension_numbers<[1], [0], [0], [1], [0, 0, 1, 1], [], []>} : vector<8x32xbf16>, vector<32x128xbf16>, vector<8x128xf32> -> vector<8x128xf32>
    %9 = vector.broadcast %2 : vector<1x128xf32> to vector<8x128xf32>
    %10 = arith.addf %8, %9 : vector<8x128xf32>
    %cst_13 = arith.constant 0.000000e+00 : f32
    %11 = vector.broadcast %cst_13 : f32 to vector<8x128xf32>
    %12 = arith.maximumf %10, %11 : vector<8x128xf32>
    %13 = arith.truncf %12 : vector<8x128xf32> to vector<8x128xbf16>
    %cst_14 = arith.constant dense<0.000000e+00> : vector<8x128xf32>
    %14 = tpu.matmul %13, %3, %cst_14 {dimension_numbers = #tpu.dot_dimension_numbers<[1], [0], [0], [1], [0, 0, 1, 1], [], []>} : vector<8x128xbf16>, vector<128x128xbf16>, vector<8x128xf32> -> vector<8x128xf32>
    %15 = vector.broadcast %4 : vector<1x128xf32> to vector<8x128xf32>
    %16 = arith.addf %14, %15 : vector<8x128xf32>
    %cst_15 = arith.constant 0.000000e+00 : f32
    %17 = vector.broadcast %cst_15 : f32 to vector<8x128xf32>
    %18 = arith.maximumf %16, %17 : vector<8x128xf32>
    %19 = arith.truncf %18 : vector<8x128xf32> to vector<8x128xbf16>
    %cst_16 = arith.constant dense<0.000000e+00> : vector<8x128xf32>
    %20 = tpu.matmul %19, %5, %cst_16 {dimension_numbers = #tpu.dot_dimension_numbers<[1], [0], [0], [1], [0, 0, 1, 1], [], []>} : vector<8x128xbf16>, vector<128x128xbf16>, vector<8x128xf32> -> vector<8x128xf32>
    %21 = vector.broadcast %6 : vector<1x128xf32> to vector<8x128xf32>
    %22 = arith.addf %20, %21 : vector<8x128xf32>
    %23 = vector.extract_strided_slice %22 {offsets = [0, 0], sizes = [8, 8], strides = [1, 1]} : vector<8x128xf32> to vector<8x8xf32>
    %24 = math.tanh %23 : vector<8x8xf32>
    %c0_17 = arith.constant 0 : index
    %c0_18 = arith.constant 0 : index
    %25 = vector.load %arg8[%c0_17, %c0_18] : memref<8x8xf32, #tpu.memory_space<vmem>>, vector<8x8xf32>
    tpu.vector_store %arg8[%c0_17, %c0_18], %24 {strides = array<i32>} : memref<8x8xf32, #tpu.memory_space<vmem>>, vector<8x8xf32>,
    return
  }
  func.func @transform_0(%arg0: i32) -> (i32, i32) {
    %c0_i32 = arith.constant 0 : i32
    %c0_i32_0 = arith.constant 0 : i32
    return %arg0, %c0_i32 : i32, i32
  }
  func.func @transform_1(%arg0: i32) -> (i32, i32) {
    %c0_i32 = arith.constant 0 : i32
    %c0_i32_0 = arith.constant 0 : i32
    %c0_i32_1 = arith.constant 0 : i32
    return %c0_i32, %c0_i32_0 : i32, i32
  }
  func.func @transform_2(%arg0: i32) -> (i32, i32) {
    %c0_i32 = arith.constant 0 : i32
    %c0_i32_0 = arith.constant 0 : i32
    %c0_i32_1 = arith.constant 0 : i32
    return %c0_i32, %c0_i32_0 : i32, i32
  }
  func.func @transform_3(%arg0: i32) -> (i32, i32) {
    %c0_i32 = arith.constant 0 : i32
    %c0_i32_0 = arith.constant 0 : i32
    %c0_i32_1 = arith.constant 0 : i32
    return %c0_i32, %c0_i32_0 : i32, i32
  }
  func.func @transform_4(%arg0: i32) -> (i32, i32) {
    %c0_i32 = arith.constant 0 : i32
    %c0_i32_0 = arith.constant 0 : i32
    %c0_i32_1 = arith.constant 0 : i32
    return %c0_i32, %c0_i32_0 : i32, i32
  }
  func.func @transform_5(%arg0: i32) -> (i32, i32) {
    %c0_i32 = arith.constant 0 : i32
    %c0_i32_0 = arith.constant 0 : i32
    %c0_i32_1 = arith.constant 0 : i32
    return %c0_i32, %c0_i32_0 : i32, i32
  }
  func.func @transform_6(%arg0: i32) -> (i32, i32) {
    %c0_i32 = arith.constant 0 : i32
    %c0_i32_0 = arith.constant 0 : i32
    %c0_i32_1 = arith.constant 0 : i32
    return %c0_i32, %c0_i32_0 : i32, i32
  }
  func.func @transform_7(%arg0: i32) -> (i32, i32) {
    %c0_i32 = arith.constant 0 : i32
    %c0_i32_0 = arith.constant 0 : i32
    return %arg0, %c0_i32 : i32, i32
  }
}

</mosaic_0001>

<bundles_post_ra>
// kernel: tpu_custom_call.1
= control target key start
LH: loop header
LB: loop body
LE: loop exit
PB: predicated region body
PF: predicated region fallthrough
CT: control target
= control target key end

     0   :  { %12 = vsyncpa [#allocation3], 0  ;;  %s730_s0 = inlined_call_operand.hbm [shape: f32[8,32], index: 0, kind: input, shape index: {}]   ;;  %s731_s1 = inlined_call_operand.hbm [shape: bf16[32,128], index: 1, kind: input, shape index: {}]   ;;  %s732_s2 = inlined_call_operand.vmem [shape: f32[1,128], index: 2, kind: input, shape index: {}]   ;;  %s733_s3 = inlined_call_operand.hbm [shape: bf16[128,128], index: 3, kind: input, shape index: {}]   ;;  %s734_s4 = inlined_call_operand.vmem [shape: f32[1,128], index: 4, kind: input, shape index: {}]   ;;  %s735_s5 = inlined_call_operand.hbm [shape: bf16[128,128], index: 5, kind: input, shape index: {}]   ;;  %s736_s6 = inlined_call_operand.vmem [shape: f32[1,128], index: 6, kind: input, shape index: {}]   ;;  %s737_s7 = inlined_call_operand.hbm [shape: f32[8,8], index: 7, kind: output, shape index: {}]  }
   0x1   :  { %13 = vsyncpa [#allocation6], 0 }
   0x2   :  { %14 = vsyncpa [#allocation9], 0 }
   0x3   :  { %15 = vsyncpa [#allocation4], 0  ;;  %s624_s24 = smov [#allocation5]  }
   0x4   :  { %s31_s25 = sshll.u32 %s624_s24, 4  ;;  %s32_s25 = int_to_ptr.vmem [resolvable:$true] %s31_s25 }
   0x5   :  { %s524_s26 = scalar_lea.vmem %s32_s25, 256  ;;  %p529_p1 = scmp.lt.s32.totalorder %s32_s25, %s32_s25 }
   0x6   :  { %p525_p0 = scmp.ne.s32.totalorder %s32_s25, %s524_s26  ;;  %p530_p2 = scmp.lt.s32.totalorder %s524_s26, %s524_s26 }
   0x8   :  { %p531_p3 = por %p530_p2, %p529_p1 }
   0xa   :  { %p532_p4 = pnand %p531_p3, %p525_p0 }
   0xc   :  { %535 = shalt.err (!%p532_p4)
}
   0xd   :  { %s625_s27 = smov 64   ;;  %s626_s28 = smov 4  }
   0xe   :  { %37 = dma.hbm_to_vmem [thread:$0]  %s731_s1, 256, %s32_s25, [#allocation6], %s625_s27, %s625_s27, %s626_s28  }
   0xf   :  { %s627_s8 = smov [#allocation2]   ;;  %s628_s10 = smov [#allocation7]  }
  0x10   :  { %s22_s9 = sshll.u32 %s627_s8, 4  ;;  %s45_s11 = sshll.u32 %s628_s10, 4  ;;  %s23_s9 = int_to_ptr.vmem [resolvable:$true] %s22_s9  ;;  %s46_s11 = int_to_ptr.vmem [resolvable:$true] %s45_s11 }
  0x11   :  { %s544_s12 = scalar_lea.vmem %s23_s9, 128  ;;  %p549_p6 = scmp.lt.s32.totalorder %s23_s9, %s23_s9 }
  0x12   :  { %p545_p5 = scmp.ne.s32.totalorder %s23_s9, %s544_s12  ;;  %p550_p7 = scmp.lt.s32.totalorder %s544_s12, %s544_s12 }
  0x14   :  { %p551_p8 = por %p550_p7, %p549_p6 }
  0x16   :  { %p552_p9 = pnand %p551_p8, %p545_p5 }
  0x18   :  { %555 = shalt.err (!%p552_p9)
}
  0x19   :  { %25 = dma.hbm_to_vmem [thread:$0]  %s730_s0, 128, %s23_s9, [#allocation3]  }
  0x1a   :  { %s564_s15 = scalar_lea.vmem %s46_s11, 1024  ;;  %p569_p11 = scmp.lt.s32.totalorder %s46_s11, %s46_s11 }
  0x1b   :  { %p565_p10 = scmp.ne.s32.totalorder %s46_s11, %s564_s15  ;;  %p570_p12 = scmp.lt.s32.totalorder %s564_s15, %s564_s15 }
  0x1d   :  { %p571_p13 = por %p570_p12, %p569_p11 }
  0x1f   :  { %p572_p0 = pnand %p571_p13, %p565_p10 }
  0x21   :  { %575 = shalt.err (!%p572_p0)
}
  0x22   :  { %51 = dma.hbm_to_vmem [thread:$0]  %s733_s3, 1024, %s46_s11, [#allocation6], %s625_s27, %s625_s27, %s626_s28  }
  0x23   :  { %s629_s17 = smov [#allocation8]  }
  0x24   :  { %s59_s18 = sshll.u32 %s629_s17, 4  ;;  %s60_s18 = int_to_ptr.vmem [resolvable:$true] %s59_s18 }
  0x25   :  { %s584_s19 = scalar_lea.vmem %s60_s18, 1024  ;;  %p589_p2 = scmp.lt.s32.totalorder %s60_s18, %s60_s18 }
  0x26   :  { %p585_p1 = scmp.ne.s32.totalorder %s60_s18, %s584_s19  ;;  %p590_p3 = scmp.lt.s32.totalorder %s584_s19, %s584_s19 }
  0x28   :  { %p591_p4 = por %p590_p3, %p589_p2 }
  0x2a   :  { %p592_p5 = pnand %p591_p4, %p585_p1 }
  0x2c   :  { %595 = shalt.err (!%p592_p5)
}
  0x2d   :  { %65 = dma.hbm_to_vmem [thread:$0]  %s735_s5, 1024, %s60_s18, [#allocation9], %s625_s27, %s625_s27, %s626_s28  }
  0x2e   :  { %616 = dma.done.wait [#allocation3], 128  }
  0x2f   :  { %617 = vsyncadd [#allocation3], 4294967168 }
  0x30   :  { %618 = dma.done.wait [#allocation6], 1280  }
  0x31   :  { %619 = vsyncadd [#allocation6], 4294966016 }
  0x32   :  { %620 = dma.done.wait [#allocation9], 1024  }
  0x33   :  { %621 = vsyncadd [#allocation9], 4294966272  ;;  %v630_v0 = vmov 0.0   ;;  %vm631_vm0 = vmmov 0   ;;  %v496_v1 = vld [vmem:[#allocation5 + $0x8] sm:$0xff]   ;;  %v497_v2 = vld [vmem:[#allocation5] sm:$0xff]  }
  0x34   :  { %439 = vmatprep.subr.bf16.mxu0 %v630_v0  ;;  %443 = vmatprep.mubr.msk.bf16.mxu0 %vm631_vm0, %v630_v0  ;;  %v81_v3 = vld [vmem:[#allocation2] sm:$0xff]  ;;  %v498_v4 = vld [vmem:[#allocation7 + $0x38] sm:$0xff]   ;;  %v499_v6 = vld [vmem:[#allocation7 + $0x30] sm:$0xff]   ;;  %vm140_vm1 = vcmask 261120   ;;  %s632_s24 = smov [#allocation10]   ;;  %vm377_vm2 = vcmask 64512  }
  0x35   :  { %447 = vmatprep.subr.bf16.mxu1 %v630_v0  ;;  %463 = vmatprep.mubr.msk.bf16.mxu1 %vm631_vm0, %v630_v0  ;;  %v121_v5 = vpack.c.bf16 %v81_v3, %v81_v3  ;;  %v500_v7 = vld [vmem:[#allocation7 + $0x28] sm:$0xff]   ;;  %v501_v8 = vld [vmem:[#allocation7 + $0x20] sm:$0xff]   ;;  %v502_v9 = vld [vmem:[#allocation7 + $0x18] sm:$0xff]  }
  0x36   :  { %440 = vmatpush3.bf16.msra.mxu0 %v496_v1  ;;  %448 = vmatpush3.bf16.msra.mxu1 %v498_v4  ;;  %v503_v10 = vld [vmem:[#allocation7 + $0x10] sm:$0xff]   ;;  %v504_v11 = vld [vmem:[#allocation7 + $0x8] sm:$0xff]   ;;  %v505_v12 = vld [vmem:[#allocation7] sm:$0xff]  }
  0x37   :  { %441 = vmatprep.subr.bf16.mxu0 %v630_v0  ;;  %449 = vmatprep.subr.bf16.mxu1 %v630_v0  ;;  %v506_v13 = vld [vmem:[#allocation8 + $0x38] sm:$0xff]   ;;  %v507_v14 = vld [vmem:[#allocation8 + $0x30] sm:$0xff]   ;;  %v508_v15 = vld [vmem:[#allocation8 + $0x28] sm:$0xff]  }
  0x38   :  { %v509_v16 = vld [vmem:[#allocation8 + $0x20] sm:$0xff]   ;;  %v510_v17 = vld [vmem:[#allocation8 + $0x18] sm:$0xff]   ;;  %v511_v18 = vld [vmem:[#allocation8 + $0x10] sm:$0xff]  }
  0x39   :  { %v396_v19 = vld [vmem:[%s732_s2] ss:$0 sm:$0xff]  ;;  %v513_v28 = vld [vmem:[#allocation8] sm:$0xff]  }
  0x3a   :  { %442 = vmatpush3.bf16.msra.mxu0 %v497_v2  ;;  %450 = vmatpush3.bf16.msra.mxu1 %v499_v6  ;;  %v512_v27 = vld [vmem:[#allocation8 + $0x8] sm:$0xff]  }
  0x3b   :  { %467 = vmatprep.subr.bf16.mxu0 %v630_v0  ;;  %451 = vmatprep.subr.bf16.mxu1 %v630_v0  ;;  %v400_v29 = vld [vmem:[%s734_s4] ss:$0 sm:$0xff]  ;;  %s385_s4 = sshll.u32 %s632_s24, 4  ;;  %s386_s4 = int_to_ptr.vmem [resolvable:$true] %s385_s4 }
  0x3c   :  { %v409_v37 = vld [vmem:[%s736_s6] ss:$0 sm:$0xff]  ;;  %s596_s25 = scalar_lea.vmem %s386_s4, 128  ;;  %p601_p7 = scmp.lt.s32.totalorder %s386_s4, %s386_s4 }
  0x3d   :  { %444 = vmatmul.mubr.msk.bf16.vlgmr.msra.gmra.mxu0 %vm140_vm1, %v121_v5  ;;  %p597_p6 = scmp.ne.s32.totalorder %s386_s4, %s596_s25  ;;  %p602_p8 = scmp.lt.s32.totalorder %s596_s25, %s596_s25 }
  0x3e   :  { %483 = vmatprep.mubr.msk.bf16.mxu0 %vm631_vm0, %v630_v0  ;;  %452 = vmatpush3.bf16.msra.mxu1 %v500_v7 }
  0x3f   :  { %453 = vmatprep.subr.bf16.mxu1 %v630_v0  ;;  %468 = vmatpush3.bf16.msra.mxu0 %v506_v13  ;;  %p603_p9 = por %p602_p8, %p601_p7 }
  0x40   :  { %469 = vmatprep.subr.bf16.mxu0 %v630_v0 }
  0x41   :  { %p604_p10 = pnand %p603_p9, %p597_p6 }
  0x42   :  { %454 = vmatpush3.bf16.msra.mxu1 %v501_v8 }
  0x43   :  { %455 = vmatprep.subr.bf16.mxu1 %v630_v0  ;;  %470 = vmatpush3.bf16.msra.mxu0 %v507_v14 }
  0x44   :  { %471 = vmatprep.subr.bf16.mxu0 %v630_v0 }
  0x46   :  { %456 = vmatpush3.bf16.msra.mxu1 %v502_v9 }
  0x47   :  { %457 = vmatprep.subr.bf16.mxu1 %v630_v0  ;;  %472 = vmatpush3.bf16.msra.mxu0 %v508_v15 }
  0x48   :  { %473 = vmatprep.subr.bf16.mxu0 %v630_v0 }
  0x4a   :  { %458 = vmatpush3.bf16.msra.mxu1 %v503_v10 }
  0x4b   :  { %459 = vmatprep.subr.bf16.mxu1 %v630_v0  ;;  %474 = vmatpush3.bf16.msra.mxu0 %v509_v16 }
  0x4c   :  { %475 = vmatprep.subr.bf16.mxu0 %v630_v0 }
  0x4e   :  { %460 = vmatpush3.bf16.msra.mxu1 %v504_v11 }
  0x4f   :  { %461 = vmatprep.subr.bf16.mxu1 %v630_v0  ;;  %476 = vmatpush3.bf16.msra.mxu0 %v510_v17 }
  0x50   :  { %477 = vmatprep.subr.bf16.mxu0 %v630_v0 }
  0x52   :  { %462 = vmatpush3.bf16.msra.mxu1 %v505_v12 }
  0x53   :  { %478 = vmatpush3.bf16.msra.mxu0 %v511_v18 }
  0x54   :  { %479 = vmatprep.subr.bf16.mxu0 %v630_v0 }
  0x57   :  { %480 = vmatpush3.bf16.msra.mxu0 %v512_v27 }
  0x58   :  { %481 = vmatprep.subr.bf16.mxu0 %v630_v0 }
  0x5b   :  { %482 = vmatpush3.bf16.msra.mxu0 %v513_v28 }
  0xfd   :  { %v178_v20 = vpop.f32.mrf.mxu0 }
  0xfe   :  { %v179_v21 = vadd.f32 %v396_v19, %v178_v20 }
  0xff   :  { %v445_v22 = vpop.f32.mrf.mxu0 }
 0x100   :  { %v184_v23 = vmax.f32 %v179_v21, 0.0 }
 0x101   :  { %v181_v24 = vpop.f32.mrf.mxu0 }
 0x102   :  { %v185_v25 = vpack.c.bf16 %v184_v23, %v184_v23 }
 0x103   :  { %v446_v26 = vpop.f32.mrf.mxu0 }
 0x104   :  { %464 = vmatmul.mubr.bf16.vlgmr.msra.gmra.mxu1 %v185_v25 }
 0x1c4   :  { %v274_v30 = vpop.f32.mrf.mxu1 }
 0x1c5   :  { %v275_v31 = vadd.f32 %v400_v29, %v274_v30 }
 0x1c6   :  { %v465_v32 = vpop.f32.mrf.mxu1 }
 0x1c7   :  { %v280_v33 = vmax.f32 %v275_v31, 0.0 }
 0x1c8   :  { %v277_v34 = vpop.f32.mrf.mxu1 }
 0x1c9   :  { %v281_v35 = vpack.c.bf16 %v280_v33, %v280_v33 }
 0x1ca   :  { %v466_v36 = vpop.f32.mrf.mxu1 }
 0x1cb   :  { %484 = vmatmul.mubr.bf16.vlgmr.msra.gmra.mxu0 %v281_v35 }
 0x28b   :  { %v370_v38 = vpop.f32.mrf.mxu0 }
 0x28c   :  { %v371_v39 = vadd.f32 %v409_v37, %v370_v38 }
 0x28d   :  { %v485_v40 = vpop.f32.mrf.mxu0 }
 0x28e   :  { %514 = vtanh.f32 %v371_v39 }
 0x28f   :  { %v373_v41 = vpop.f32.mrf.mxu0 }
 0x291   :  { %v486_v42 = vpop.f32.mrf.mxu0 }
 0x29b   :  { %v515_v43 = vpop.eup %514 }
 0x29c   :  { %378 = vst.msk [vmem:[#allocation10] sm:$0xff] %vm377_vm2, %v515_v43 }
 0x29d   :  { %607 = shalt.err (!%p604_p10)
}
 0x29e   :  { %388 = dma.vmem_to_hbm [thread:$0]  %s386_s4, 128, %s737_s7, [#allocation4]  }
 0x29f   :  { %622 = dma.done.wait [#allocation4], 128  }
 0x2a0   :  { %623 = vsyncadd [#allocation4], 4294967168 }
 0x2a1   :  { %392 = vsyncpa [#allocation3], 1 }
 0x2a2   :  { %393 = vsyncpa [#allocation6], 1 }
 0x2a3   :  { %394 = vsyncpa [#allocation9], 1 }
 0x2a4   :  { %395 = vsyncpa [#allocation4], 1 }

</bundles_post_ra>
